<compile_context>
chip_gen: v5e
topology: v5e:2x2
jax: 0.10.0
libtpu: 0.0.40
codegen_flags: <defaults>
</compile_context>

<pallas_src>
import functools
import math

import jax
import jax.numpy as jnp
from jax.experimental import pallas as pl
from jax.experimental.pallas import tpu as pltpu

EPSILON = 1e-7
LANES = 128
OUT_SUBLANES = 8          # rows of each per-core partial-sum output block (f32 tile)


def _ceil_div(a, b):
    return -(-a // b)


def _round_up(a, b):
    return _ceil_div(a, b) * b


def _wbce_kernel(info_ref, yp_ref, yt_ref, pw_ref, nw_ref, o_ref, acc_ref,
                 *, steps, num_blocks, tile):
    """info_ref (SMEM, int32[3]) = [fully-valid rows, valid lanes in partial row, N]."""
    c = pl.program_id(0)            # core-split index ("parallel")
    i = pl.program_id(1)            # streamed row-block index ("arbitrary")
    gblk = c * steps + i            # global row-block id (may exceed num_blocks - 1)

    @pl.when(i == 0)
    def _init():
        acc_ref[...] = jnp.zeros_like(acc_ref)

    yp = yp_ref[...].astype(jnp.float32)     # (tile, 128)
    yt = yt_ref[...].astype(jnp.float32)     # (tile, 128)
    pw = pw_ref[...].astype(jnp.float32)     # (1, 128) or (tile, 128) -> broadcasts
    nw = nw_ref[...].astype(jnp.float32)

    # Elementwise hot path (VPU + EUP for the two logs); supports soft labels.
    loss = (-pw) * yt * jnp.log(yp + EPSILON) \
         + (-nw) * (1.0 - yt) * jnp.log(1.0 - yp + EPSILON)

    # Common path: every block except the last real one is fully valid -> no mask.
    @pl.when(gblk < num_blocks - 1)
    def _accumulate():
        acc_ref[...] += loss

    # Last real block: mask wrapper tail-padding and non-dividing-block overhang.
    @pl.when(gblk == num_blocks - 1)
    def _accumulate_masked():
        full_rows = info_ref[0]
        rem_lanes = info_ref[1]
        row = jax.lax.broadcasted_iota(jnp.int32, loss.shape, 0) + gblk * tile
        lane = jax.lax.broadcasted_iota(jnp.int32, loss.shape, 1)
        valid = (row < full_rows) | ((row == full_rows) & (lane < rem_lanes))
        acc_ref[...] += jnp.where(valid, loss, 0.0)

    # (Blocks with gblk >= num_blocks are clamped duplicates on the 2-core split
    #  when num_blocks is odd; they are simply not accumulated.)

    @pl.when(i == steps - 1)
    def _finalize():
        inv_n = 1.0 / info_ref[2].astype(jnp.float32)
        partial = jnp.sum(acc_ref[...]) * inv_n          # sum(all)/N == sum_i mean_b
        o_ref[...] = jnp.full((OUT_SUBLANES, LANES), partial, dtype=jnp.float32)


def weighted_bce_loss(y_pred, y_true, pos_weights, neg_weights, *, tile_rows=1024):
    """Pallas TPU implementation of WeightedBCELoss.forward.

    y_pred, y_true: [N, C] float arrays (probabilities / labels, soft labels ok).
    pos_weights, neg_weights: [C] per-class weights.
    Returns a scalar float32 loss.
    """
    n, c = y_pred.shape
    if not jnp.issubdtype(y_pred.dtype, jnp.floating):
        y_pred = y_pred.astype(jnp.float32)
    if not jnp.issubdtype(y_true.dtype, jnp.floating):
        y_true = y_true.astype(jnp.float32)
    pw = jnp.asarray(pos_weights, jnp.float32).reshape(-1)
    nw = jnp.asarray(neg_weights, jnp.float32).reshape(-1)

    total = n * c
    rows = _ceil_div(total, LANES)

    # Lane-dense flat layout: view [N, C] as [rows, 128].
    # Zero-copy when N*C % 128 == 0 (pure reshape); otherwise a single minimal tail
    # pad with safe values (masked exactly in the kernel's last block).
    pad = rows * LANES - total
    yp_flat = y_pred.reshape(-1)
    yt_flat = y_true.reshape(-1)
    if pad:
        yp_flat = jnp.pad(yp_flat, (0, pad), constant_values=0.5)
        yt_flat = jnp.pad(yt_flat, (0, pad), constant_values=0.0)
    yp2d = yp_flat.reshape(rows, LANES)
    yt2d = yt_flat.reshape(rows, LANES)

    # Periodic per-class weights, lane-dense. Flat element f has class f % C, so
    # lane l of flat row r has class (r*128 + l) % C, which repeats every
    # P = C / gcd(C, 128) rows -> a (P, 128) slab covers every block whose start
    # row is a multiple of P.
    period = c // math.gcd(c, LANES)
    reps = period * LANES // c
    pw_slab = jnp.tile(pw, reps).reshape(period, LANES)
    nw_slab = jnp.tile(nw, reps).reshape(period, LANES)

    # Tile size: big (amortize ~0.35us/step), multiple of 16 sublanes (bf16-friendly)
    # and of the weight period; shrink for tiny inputs.
    align = math.lcm(16, period)
    tile = max(align, (max(int(tile_rows), 1) // align) * align)
    tile = min(tile, _round_up(rows, align))

    if period > 1:
        pw_slab = jnp.tile(pw_slab, (tile // period, 1))   # (tile, 128), resident
        nw_slab = jnp.tile(nw_slab, (tile // period, 1))
    w_rows = pw_slab.shape[0]

    num_blocks = _ceil_div(rows, tile)
    steps = _ceil_div(num_blocks, 2)      # 2-way core split (v7x / megacore chips)
    grid = (2, steps)

    # Scalar-prefetch operands (SMEM): [fully-valid rows, valid lanes in the partial
    # row, batch size N] -> no recompile on changing valid-element counts.
    info = jnp.array([total // LANES, total % LANES, n], dtype=jnp.int32)

    kernel = functools.partial(_wbce_kernel, steps=steps, num_blocks=num_blocks,
                               tile=tile)

    def blk_idx(cc, ii, info_ref):
        # Clamp so the (possibly) unmatched last step of core 1 re-reads a valid
        # block; the kernel skips its accumulation via pl.when.
        return (jnp.minimum(cc * steps + ii, num_blocks - 1), 0)

    def const_idx(cc, ii, info_ref):
        return (0, 0)

    def out_idx(cc, ii, info_ref):
        return (cc, 0)

    bytes_in = rows * LANES * (jnp.dtype(yp2d.dtype).itemsize
                               + jnp.dtype(yt2d.dtype).itemsize)

    out = pl.pallas_call(
        kernel,
        out_shape=jax.ShapeDtypeStruct((2 * OUT_SUBLANES, LANES), jnp.float32),
        grid_spec=pltpu.PrefetchScalarGridSpec(
            num_scalar_prefetch=1,
            grid=grid,
            in_specs=[
                pl.BlockSpec((tile, LANES), blk_idx),       # y_pred row blocks
                pl.BlockSpec((tile, LANES), blk_idx),       # y_true row blocks
                pl.BlockSpec((w_rows, LANES), const_idx),   # pos weights (resident)
                pl.BlockSpec((w_rows, LANES), const_idx),   # neg weights (resident)
            ],
            out_specs=pl.BlockSpec((OUT_SUBLANES, LANES), out_idx),
            scratch_shapes=[pltpu.VMEM((tile, LANES), jnp.float32)],
        ),
        compiler_params=pltpu.CompilerParams(
            dimension_semantics=("parallel", "arbitrary")),
        cost_estimate=pl.CostEstimate(
            flops=int(10 * total),
            transcendentals=int(2 * total),
            bytes_accessed=int(bytes_in + 2 * w_rows * LANES * 4
                               + 2 * OUT_SUBLANES * LANES * 4 + 16),
        ),
    )(info, yp2d, yt2d, pw_slab, nw_slab)

    # Each core wrote its partial (already divided by N) into its own block.
    return out[0, 0] + out[OUT_SUBLANES, 0]


def _reference(y_pred, y_true, pos_weights, neg_weights):
    """Pure-JAX reference mirroring the PyTorch per-class loop."""
    loss = 0.0
    for i in range(pos_weights.shape[0]):
        loss_pos = -1.0 * jnp.mean(
            pos_weights[i] * y_true[:, i] * jnp.log(y_pred[:, i] + EPSILON))
        loss_neg = -1.0 * jnp.mean(
            neg_weights[i] * (1.0 - y_true[:, i]) * jnp.log(1.0 - y_pred[:, i] + EPSILON))
        loss = loss + loss_pos + loss_neg
    return loss


if __name__ == "__main__":
    key = jax.random.PRNGKey(0)
    k1, k2, k3, k4, k5, k6 = jax.random.split(key, 6)

    # Case 1: lane-aligned fast path (N*C % 128 == 0 -> zero-copy reshape). Small
    # tile so the demo exercises multi-step accumulation, the odd-block clamp/skip
    # on the 2-core axis and the last-block overhang mask:
    # rows = 34, tile = 16 -> 3 blocks, grid = (2, 2).
    N1, C1 = 272, 16
    y_pred1 = jax.nn.sigmoid(jax.random.normal(k1, (N1, C1), dtype=jnp.float32))
    y_true1 = (jax.random.uniform(k2, (N1, C1)) > 0.5).astype(jnp.float32)
    pos_w1 = jax.random.uniform(k3, (C1,), minval=0.5, maxval=2.0).astype(jnp.float32)
    neg_w1 = jax.random.uniform(k4, (C1,), minval=0.5, maxval=2.0).astype(jnp.float32)

    loss1 = jax.block_until_ready(
        weighted_bce_loss(y_pred1, y_true1, pos_w1, neg_w1, tile_rows=16))
    ref1 = _reference(y_pred1, y_true1, pos_w1, neg_w1)
    assert jnp.allclose(loss1, ref1, rtol=2e-5, atol=1e-4), (loss1, ref1)

    # Case 2: awkward class count (128 % C != 0 -> periodic weight slab, P = 5),
    # N*C % 128 != 0 (minimal tail pad + exact lane mask), soft labels.
    N2, C2 = 37, 10
    y_pred2 = jax.nn.sigmoid(jax.random.normal(k5, (N2, C2), dtype=jnp.float32))
    y_true2 = jax.random.uniform(k6, (N2, C2), dtype=jnp.float32)   # soft labels
    pos_w2 = jnp.linspace(0.5, 2.0, C2, dtype=jnp.float32)
    neg_w2 = jnp.linspace(2.0, 0.5, C2, dtype=jnp.float32)

    loss2 = jax.block_until_ready(
        weighted_bce_loss(y_pred2, y_true2, pos_w2, neg_w2))
    ref2 = _reference(y_pred2, y_true2, pos_w2, neg_w2)
    assert jnp.allclose(loss2, ref2, rtol=2e-5, atol=1e-4), (loss2, ref2)

    print("KERNEL_OK")
</pallas_src>

<mosaic_0001>
module attributes {stable_mosaic.version = 11 : i64} {
  func.func @_wbce_kernel(%arg0: i32, %arg1: i32, %arg2: memref<3xi32, #tpu.memory_space<smem>>, %arg3: memref<16x128xf32, #tpu.memory_space<vmem>>, %arg4: memref<16x128xf32, #tpu.memory_space<vmem>>, %arg5: memref<1x128xf32, #tpu.memory_space<vmem>>, %arg6: memref<1x128xf32, #tpu.memory_space<vmem>>, %arg7: memref<8x128xf32, #tpu.memory_space<vmem>>, %arg8: memref<16x128xf32, #tpu.memory_space<vmem>>) attributes {dimension_semantics = [#tpu.dimension_semantics<parallel>, #tpu.dimension_semantics<arbitrary>], iteration_bounds = array<i64: 2, 2>, scalar_prefetch = 1 : i64, scratch_operands = 1 : i64, tpu.core_type = #tpu.core_type<tc>, window_params = [{transform_indices = @transform_0, window_bounds = array<i64: 16, 128>}, {transform_indices = @transform_1, window_bounds = array<i64: 16, 128>}, {pipeline_mode = #tpu.pipeline_mode<synchronous>, transform_indices = @transform_2, window_bounds = array<i64: 1, 128>}, {pipeline_mode = #tpu.pipeline_mode<synchronous>, transform_indices = @transform_3, window_bounds = array<i64: 1, 128>}, {transform_indices = @transform_4, window_bounds = array<i64: 8, 128>}]} {
    %c2_i32 = arith.constant 2 : i32
    %0 = arith.muli %arg0, %c2_i32 : i32
    %1 = arith.addi %0, %arg1 : i32
    %c0_i32 = arith.constant 0 : i32
    %2 = arith.cmpi eq, %arg1, %c0_i32 : i32
    %3 = arith.extui %2 : i1 to i32
    %c0_i32_0 = arith.constant 0 : i32
    %4 = arith.cmpi ne, %3, %c0_i32_0 : i32
    scf.if %4 {
      %cst_18 = arith.constant 0.000000e+00 : f32
      %39 = vector.broadcast %cst_18 : f32 to vector<16x128xf32>
      %c0_19 = arith.constant 0 : index
      %c0_20 = arith.constant 0 : index
      %40 = vector.load %arg8[%c0_19, %c0_20] : memref<16x128xf32, #tpu.memory_space<vmem>>, vector<16x128xf32>
      tpu.vector_store %arg8[%c0_19, %c0_20], %39 {strides = array<i32>} : memref<16x128xf32, #tpu.memory_space<vmem>>, vector<16x128xf32>,
    } else {
    }
    %c0 = arith.constant 0 : index
    %c0_1 = arith.constant 0 : index
    %5 = vector.load %arg3[%c0, %c0_1] : memref<16x128xf32, #tpu.memory_space<vmem>>, vector<16x128xf32>
    %c0_2 = arith.constant 0 : index
    %c0_3 = arith.constant 0 : index
    %6 = vector.load %arg4[%c0_2, %c0_3] : memref<16x128xf32, #tpu.memory_space<vmem>>, vector<16x128xf32>
    %c0_4 = arith.constant 0 : index
    %c0_5 = arith.constant 0 : index
    %7 = vector.load %arg5[%c0_4, %c0_5] : memref<1x128xf32, #tpu.memory_space<vmem>>, vector<1x128xf32>
    %c0_6 = arith.constant 0 : index
    %c0_7 = arith.constant 0 : index
    %8 = vector.load %arg6[%c0_6, %c0_7] : memref<1x128xf32, #tpu.memory_space<vmem>>, vector<1x128xf32>
    %cst = arith.constant 0.000000e+00 : f32
    %9 = vector.broadcast %cst : f32 to vector<1x128xf32>
    %10 = arith.subf %9, %7 : vector<1x128xf32>
    %11 = vector.broadcast %10 : vector<1x128xf32> to vector<16x128xf32>
    %12 = arith.mulf %11, %6 : vector<16x128xf32>
    %cst_8 = arith.constant 1.000000e-07 : f32
    %13 = vector.broadcast %cst_8 : f32 to vector<16x128xf32>
    %14 = arith.addf %5, %13 : vector<16x128xf32>
    %15 = math.log %14 : vector<16x128xf32>
    %16 = arith.mulf %12, %15 : vector<16x128xf32>
    %cst_9 = arith.constant 0.000000e+00 : f32
    %17 = vector.broadcast %cst_9 : f32 to vector<1x128xf32>
    %18 = arith.subf %17, %8 : vector<1x128xf32>
    %cst_10 = arith.constant 1.000000e+00 : f32
    %19 = vector.broadcast %cst_10 : f32 to vector<16x128xf32>
    %20 = arith.subf %19, %6 : vector<16x128xf32>
    %21 = vector.broadcast %18 : vector<1x128xf32> to vector<16x128xf32>
    %22 = arith.mulf %21, %20 : vector<16x128xf32>
    %cst_11 = arith.constant 1.000000e+00 : f32
    %23 = vector.broadcast %cst_11 : f32 to vector<16x128xf32>
    %24 = arith.subf %23, %5 : vector<16x128xf32>
    %cst_12 = arith.constant 1.000000e-07 : f32
    %25 = vector.broadcast %cst_12 : f32 to vector<16x128xf32>
    %26 = arith.addf %24, %25 : vector<16x128xf32>
    %27 = math.log %26 : vector<16x128xf32>
    %28 = arith.mulf %22, %27 : vector<16x128xf32>
    %29 = arith.addf %16, %28 : vector<16x128xf32>
    %c2_i32_13 = arith.constant 2 : i32
    %30 = arith.cmpi slt, %1, %c2_i32_13 : i32
    %31 = arith.extui %30 : i1 to i32
    %c0_i32_14 = arith.constant 0 : i32
    %32 = arith.cmpi ne, %31, %c0_i32_14 : i32
    scf.if %32 {
      %c0_18 = arith.constant 0 : index
      %c0_19 = arith.constant 0 : index
      %39 = vector.load %arg8[%c0_18, %c0_19] : memref<16x128xf32, #tpu.memory_space<vmem>>, vector<16x128xf32>
      %40 = arith.addf %39, %29 : vector<16x128xf32>
      %c0_20 = arith.constant 0 : index
      %c0_21 = arith.constant 0 : index
      %41 = vector.load %arg8[%c0_20, %c0_21] : memref<16x128xf32, #tpu.memory_space<vmem>>, vector<16x128xf32>
      tpu.vector_store %arg8[%c0_20, %c0_21], %40 {strides = array<i32>} : memref<16x128xf32, #tpu.memory_space<vmem>>, vector<16x128xf32>,
    } else {
    }
    %c2_i32_15 = arith.constant 2 : i32
    %33 = arith.cmpi eq, %1, %c2_i32_15 : i32
    %34 = arith.extui %33 : i1 to i32
    %c0_i32_16 = arith.constant 0 : i32
    %35 = arith.cmpi ne, %34, %c0_i32_16 : i32
    scf.if %35 {
      %c0_18 = arith.constant 0 : index
      %39 = memref.load %arg2[%c0_18] : memref<3xi32, #tpu.memory_space<smem>>
      %c1 = arith.constant 1 : index
      %40 = memref.load %arg2[%c1] : memref<3xi32, #tpu.memory_space<smem>>
      %41 = tpu.iota {dimensions = array<i32: 0>} : vector<16x128xi32>
      %c16_i32 = arith.constant 16 : i32
      %42 = arith.muli %1, %c16_i32 : i32
      %43 = vector.broadcast %42 : i32 to vector<16x128xi32>
      %44 = arith.addi %41, %43 : vector<16x128xi32>
      %45 = tpu.iota {dimensions = array<i32: 1>} : vector<16x128xi32>
      %46 = vector.broadcast %39 : i32 to vector<16x128xi32>
      %47 = arith.cmpi slt, %44, %46 : vector<16x128xi32>
      %48 = vector.broadcast %39 : i32 to vector<16x128xi32>
      %49 = arith.cmpi eq, %44, %48 : vector<16x128xi32>
      %50 = vector.broadcast %40 : i32 to vector<16x128xi32>
      %51 = arith.cmpi slt, %45, %50 : vector<16x128xi32>
      %52 = arith.andi %49, %51 : vector<16x128xi1>
      %53 = arith.ori %47, %52 : vector<16x128xi1>
      %c0_19 = arith.constant 0 : index
      %c0_20 = arith.constant 0 : index
      %54 = vector.load %arg8[%c0_19, %c0_20] : memref<16x128xf32, #tpu.memory_space<vmem>>, vector<16x128xf32>
      %cst_21 = arith.constant 0.000000e+00 : f32
      %55 = vector.broadcast %cst_21 : f32 to vector<16x128xf32>
      %56 = arith.select %53, %29, %55 : vector<16x128xi1>, vector<16x128xf32>
      %57 = arith.addf %54, %56 : vector<16x128xf32>
      %c0_22 = arith.constant 0 : index
      %c0_23 = arith.constant 0 : index
      %58 = vector.load %arg8[%c0_22, %c0_23] : memref<16x128xf32, #tpu.memory_space<vmem>>, vector<16x128xf32>
      tpu.vector_store %arg8[%c0_22, %c0_23], %57 {strides = array<i32>} : memref<16x128xf32, #tpu.memory_space<vmem>>, vector<16x128xf32>,
    } else {
    }
    %c1_i32 = arith.constant 1 : i32
    %36 = arith.cmpi eq, %arg1, %c1_i32 : i32
    %37 = arith.extui %36 : i1 to i32
    %c0_i32_17 = arith.constant 0 : i32
    %38 = arith.cmpi ne, %37, %c0_i32_17 : i32
    scf.if %38 {
      %c2 = arith.constant 2 : index
      %39 = memref.load %arg2[%c2] : memref<3xi32, #tpu.memory_space<smem>>
      %40 = arith.sitofp %39 : i32 to f32
      %cst_18 = arith.constant 1.000000e+00 : f32
      %41 = arith.divf %cst_18, %40 : f32
      %c0_19 = arith.constant 0 : index
      %c0_20 = arith.constant 0 : index
      %42 = vector.load %arg8[%c0_19, %c0_20] : memref<16x128xf32, #tpu.memory_space<vmem>>, vector<16x128xf32>
      %43 = vector.shape_cast %42 : vector<16x128xf32> to vector<1x16x128xf32>
      %cst_21 = arith.constant dense<0.000000e+00> : vector<1xf32>
      %44 = vector.multi_reduction <add>, %43, %cst_21 [1, 2] : vector<1x16x128xf32> to vector<1xf32>
      %45 = vector.shape_cast %44 : vector<1xf32> to vector<1x1x1xf32>
      %46 = vector.extract %45[0, 0, 0] : f32 from vector<1x1x1xf32>
      %47 = arith.mulf %46, %41 : f32
      %48 = vector.broadcast %47 : f32 to vector<8x128xf32>
      %c0_22 = arith.constant 0 : index
      %c0_23 = arith.constant 0 : index
      %49 = vector.load %arg7[%c0_22, %c0_23] : memref<8x128xf32, #tpu.memory_space<vmem>>, vector<8x128xf32>
      tpu.vector_store %arg7[%c0_22, %c0_23], %48 {strides = array<i32>} : memref<8x128xf32, #tpu.memory_space<vmem>>, vector<8x128xf32>,
    } else {
    }
    return
  }
  func.func @transform_0(%arg0: i32, %arg1: i32, %arg2: memref<3xi32, #tpu.memory_space<smem>>) -> (i32, i32) {
    %c2_i32 = arith.constant 2 : i32
    %0 = arith.muli %arg0, %c2_i32 : i32
    %1 = arith.addi %0, %arg1 : i32
    %c2_i32_0 = arith.constant 2 : i32
    %2 = arith.minsi %1, %c2_i32_0 : i32
    %c0_i32 = arith.constant 0 : i32
    %c0_i32_1 = arith.constant 0 : i32
    return %2, %c0_i32 : i32, i32
  }
  func.func @transform_1(%arg0: i32, %arg1: i32, %arg2: memref<3xi32, #tpu.memory_space<smem>>) -> (i32, i32) {
    %c2_i32 = arith.constant 2 : i32
    %0 = arith.muli %arg0, %c2_i32 : i32
    %1 = arith.addi %0, %arg1 : i32
    %c2_i32_0 = arith.constant 2 : i32
    %2 = arith.minsi %1, %c2_i32_0 : i32
    %c0_i32 = arith.constant 0 : i32
    %c0_i32_1 = arith.constant 0 : i32
    return %2, %c0_i32 : i32, i32
  }
  func.func @transform_2(%arg0: i32, %arg1: i32, %arg2: memref<3xi32, #tpu.memory_space<smem>>) -> (i32, i32) {
    %c0_i32 = arith.constant 0 : i32
    %c0_i32_0 = arith.constant 0 : i32
    %c0_i32_1 = arith.constant 0 : i32
    return %c0_i32, %c0_i32_0 : i32, i32
  }
  func.func @transform_3(%arg0: i32, %arg1: i32, %arg2: memref<3xi32, #tpu.memory_space<smem>>) -> (i32, i32) {
    %c0_i32 = arith.constant 0 : i32
    %c0_i32_0 = arith.constant 0 : i32
    %c0_i32_1 = arith.constant 0 : i32
    return %c0_i32, %c0_i32_0 : i32, i32
  }
  func.func @transform_4(%arg0: i32, %arg1: i32, %arg2: memref<3xi32, #tpu.memory_space<smem>>) -> (i32, i32) {
    %c0_i32 = arith.constant 0 : i32
    %c0_i32_0 = arith.constant 0 : i32
    return %arg0, %c0_i32 : i32, i32
  }
}

</mosaic_0001>

<bundles_post_ra>
// kernel: tpu_custom_call.1
= control target key start
LH: loop header
LB: loop body
LE: loop exit
PB: predicated region body
PF: predicated region fallthrough
CT: control target
= control target key end

     0   :  { %s965_s21 = smov [#allocation4]   ;;  %s1296_s0 = inlined_call_operand.hbm [shape: s32[3], index: 0, kind: input, shape index: {}]   ;;  %s1297_s1 = inlined_call_operand.hbm [shape: f32[34,128], index: 1, kind: input, shape index: {}]   ;;  %s1298_s2 = inlined_call_operand.hbm [shape: f32[34,128], index: 2, kind: input, shape index: {}]   ;;  %s1299_s3 = inlined_call_operand.vmem [shape: f32[1,128], index: 3, kind: input, shape index: {}]   ;;  %s1300_s4 = inlined_call_operand.vmem [shape: f32[1,128], index: 4, kind: input, shape index: {}]   ;;  %s1301_s5 = inlined_call_operand.hbm [shape: f32[16,128], index: 5, kind: output, shape index: {}]  }
   0x1   :  { %1308 = sst [smem:[#allocation22_spill]] %s1297_s1  ;;  %s11_s20 = sshll.u32 %s1296_s0, 4  ;;  %s12_s20 = int_to_ptr.hbm [resolvable:$true] %s11_s20 }
   0x2   :  { %14 = dma.hbm_to_smem %s12_s20, 16, %s965_s21, [#allocation3] }
   0x3   :  { %907 = dma.done.wait [#allocation3], 16 }
   0x4   :  { %908 = vsyncadd [#allocation3], 4294967280 }
   0x5   :  { %17 = sfence }
   0x6   :  { %18 = vsyncpa [#allocation6], 0 }
   0x7   :  { %20 = vsyncpa [#allocation6 + $0x1], 0 }
   0x8   :  { %21 = vsyncpa [#allocation9], 0 }
   0x9   :  { %23 = vsyncpa [#allocation9 + $0x1], 0 }
   0xa   :  { %24 = vsyncpa [#allocation7], 0 }
   0xb   :  { %26 = vsyncpa [#allocation7 + $0x1], 0  ;;  %s1006_s22 = smov 0   ;;  %s1008_s23 = smov 0  }
   0xc   :  { %s1010_s24 = smov 0   ;;  %s1012_s25 = smov 0  }
   0xd   :  { %s1014_s0 = smov 0   ;;  %s1016_s26 = smov 0  }
   0xe   :  { %s1018_s27 = smov 0   ;;  %s1020_s28 = smov 0  }
   0xf   :  { %s1022_s29 = smov 0   ;;  %s1024_s30 = smov 0  }
  0x10   :  { %s1026_s6 = smov 0  }
  0x11 LB: > { %1309 = sst [smem:[#allocation15_spill]] %s931_s24  ;;  %s586_s7 = sadd.s32 4294967295, %s963_s6   ;;  %s963_s6 = sphi %s1026_s6, %s32_s6   ;;  %s959_s30 = sphi %s1024_s30, %s1336_s30   ;;  %s955_s29 = sphi %s1022_s29, %s1329_s29   ;;  %s951_s28 = sphi %s1020_s28, %s1328_s28   ;;  %s947_s27 = sphi %s1018_s27, %s1327_s27   ;;  %s943_s26 = sphi %s1016_s26, %s1335_s26   ;;  %s939_s0 = sphi %s1014_s0, %s1334_s0   ;;  %s935_s25 = sphi %s1012_s25, %s1333_s25   ;;  %s931_s24 = sphi %s1010_s24, %s1325_s24   ;;  %s927_s23 = sphi %s1008_s23, %s1332_s23   ;;  %s923_s22 = sphi %s1006_s22, %s1331_s22  }
  0x12   : > { %1310 = sst [smem:[#allocation16_spill]] %s955_s29  ;;  %s587_s8 = sadd.s32 4294967294, %s963_s6  }
  0x13   : > { %1311 = sst [smem:[#allocation17_spill]] %s959_s30  ;;  %s41_s9 = sadd.s32 1, %s955_s29 }
  0x14   : > { %s44_s10 = sadd.s32 1, %s959_s30  ;;  %p42_p0 = scmp.ge.s32.totalorder %s41_s9, 2 }
  0x15   : > { %s588_s11 = sshll.u32 %s959_s30, 1  ;;  %s59_s13 = sadd.s32 1, %s943_s26 }
  0x16   : > { %s49_s12 = sadd.s32 %s955_s29, %s588_s11  ;;  %s1338_s9 = smov (%p42_p0, %s41_s9), 0 }
  0x17   : > { %1312 = sst [smem:[#allocation18_spill]] %s1338_s9  ;;  %s1340_s10 = smov (!%p42_p0, %s44_s10), %s959_s30 }
  0x18   : > { %p50_p1 = scmp.lt.s32.totalorder %s49_s12, 2  ;;  %p66_p2 = scmp.ne.s32.totalorder %s943_s26, %s939_s0 }
  0x19   : > { %p46_p3 = scmp.ge.s32.totalorder %s1340_s10, 2  ;;  %p67_p4 = scmp.eq.s32.totalorder %s963_s6, 0 }
  0x1a   : > { %s1342_s12 = smov (!%p50_p1, %s49_s12), 2  ;;  %p72_p6 = scmp.ne.s32.totalorder %s939_s0, %s935_s25 }
  0x1b   : > { %s1344_s10 = smov (%p46_p3, %s1340_s10), 0  ;;  %p1078_p5 = por %p67_p4, %p66_p2 }
  0x1c   : > { %1313 = sst [smem:[#allocation19_spill]] %s1344_s10  ;;  %s589_s15 = sshll.u32 %s1344_s10, 1 }
  0x1d   : > { %p73_p7 = scmp.eq.s32.totalorder %s586_s7, 0  ;;  %s53_s16 = sadd.s32 %s589_s15, %s1338_s9 }
  0x1e   : > { %s158_s17 = ssub.s32 %s959_s30, %s1344_s10  ;;  %p54_p8 = scmp.lt.s32.totalorder %s53_s16, 2 }
  0x1f   : > { %p1090_p9 = por %p73_p7, %p72_p6  ;;  %p159_p10 = scmp.eq.s32.totalorder %s158_s17, 0 }
  0x20   : > { %s161_s19 = sadd.s32 1, %s931_s24  ;;  %s1346_s16 = smov (!%p54_p8, %s53_s16), 2 }
  0x21   : > { %s1096_s20 = scalar_select %p159_p10, %s931_s24, %s161_s19  }
  0x22   : > { %s56_s21 = ssub.s32 %s1342_s12, %s1346_s16  ;;  %p171_p11 = scmp.ne.s32.totalorder %s931_s24, %s927_s23 }
  0x23   : > { %1316 = sst [smem:[#allocation20_spill]] %s1096_s20  ;;  %p57_p12 = scmp.eq.s32.totalorder %s56_s21, 0 }
  0x24   : > { %p172_p13 = scmp.eq.s32.totalorder %s586_s7, 3  ;;  %p177_p0 = scmp.ne.s32.totalorder %s927_s23, %s923_s22 }
  0x25   : > { %p178_p1 = scmp.eq.s32.totalorder %s587_s8, 3  ;;  %p593_p4 = scmp.ge.s32.totalorder %s963_s6, 4 }
  0x26   : > { %s1108_s25 = scalar_select %p57_p12, %s943_s26, %s59_s13  }
  0x27   : > { %p1110_p2 = por %p172_p13, %p171_p11  ;;  %p1114_p3 = por %p178_p1, %p177_p0 }
  0x28   : > { %1317 = sst [smem:[#allocation21_spill]] %s1108_s25  ;;  %200 = sbr.rel (%p593_p4) target bundleno = 124 (0x7c), region = 24 }
  0x2d   : > { %203 = sbr.rel (!%p1078_p5) target bundleno = 88 (0x58), region = 28  ;;  %s204_s7 = sand.u32 (%p1078_p5), 1, %s943_s26  }
  0x2e   : > { %s596_s8 = sshll.u32 (%p1078_p5), %s1342_s12, 1  ;;  %s594_s13 = sshll.u32 (%p1078_p5), %s204_s7, 4 }
  0x2f   : > { %s214_s16 = ssub.s32 (%p1078_p5), 5, %s596_s8  ;;  %s1126_s10 = scalar_lea.sflag (%p1078_p5), [#allocation6], %s204_s7 }
  0x30   : > { %p215_p6 = scmp.lt.s32.totalorder (%p1078_p5), %s214_s16, 2  ;;  %s208_s9 = scalar_lea.vmem (%p1078_p5), [#allocation5], %s594_s13 }
  0x32   : > { %s1348_s16 = smov (!%p215_p6, %s214_s16), 2 }
  0x33   : > { %s597_s17 = sshll.u32 %s1348_s16, 3 }
  0x34   : > { %s218_s19 = ssub.s32 16, %s597_s17 }
  0x35   : > { %s219_s21 = sshll.u32 %s218_s19, 4 }
  0x36   : > { %220 = vsyncadd %s1126_s10, %s219_s21  ;;  %p1129_p7 = scmp.ne.s32.totalorder %s597_s17, 0  ;;  %s626_s8 = sshll.u32 %s1342_s12, 4 }
  0x37   : > { %s1321_s1 = sld [smem:[#allocation22_spill]]  ;;  %s1137_s24 = sshll.u32 %s208_s9, 4  ;;  %s228_s24 = int_to_ptr.vmem [resolvable:$true] %s1137_s24 }
  0x38   : > { %s1307_s13 = sshll.u32 %s1348_s16, 7 }
  0x39   : > { %s759_s17 = sshrl.u32 %s1307_s13, 4 }
  0x3d   : > { %s223_s20 = scalar_lea.hbm %s1321_s1, %s626_s8  ;;  %s768_s9 = scalar_lea.hbm %s1321_s1, 40 }
  0x3e   : > { %s225_s7 = sshll.u32 %s223_s20, 4  ;;  %s1140_s7 = int_to_ptr.hbm [resolvable:$true] %s225_s7 }
  0x3f   : > { %s757_s19 = sshra.s32 %s1140_s7, 4  ;;  %s758_s19 = int_to_ptr.hbm [resolvable:$true] %s757_s19 }
  0x40   : > { %s764_s21 = scalar_lea.hbm %s758_s19, %s759_s17 }
  0x41   : > { %p765_p8 = scmp.ne.s32.totalorder %s758_s19, %s764_s21  ;;  %p770_p12 = scmp.lt.s32.totalorder %s768_s9, %s764_s21 }
  0x43   : > { %p766_p10 = pnand %p765_p8, %p1129_p7 }
  0x45   : > { %p767_p11 = pneg %p766_p10 }
  0x47   : > { %p772_p13 = pnand %p770_p12, %p767_p11 }
  0x49   : > { %775 = shalt.err (!%p772_p13)
}
  0x4a   : > { %s776_s20 = sshra.s32 %s228_s24, 4  ;;  %s966_s19 = smov [#allocation5]   ;;  %s777_s20 = int_to_ptr.vmem [resolvable:$true] %s776_s20 }
  0x4b   : > { %s783_s8 = scalar_lea.vmem %s777_s20, %s759_s17  ;;  %s787_s13 = scalar_lea.vmem %s966_s19, 32 }
  0x4c   : > { %p784_p0 = scmp.ne.s32.totalorder %s777_s20, %s783_s8  ;;  %p789_p6 = scmp.lt.s32.totalorder %s787_s13, %s783_s8 }
  0x4e   : > { %p785_p1 = pnand %p784_p0, %p1129_p7 }
  0x50   : > { %p786_p4 = pneg %p785_p1 }
  0x52   : > { %p791_p8 = pnand %p789_p6, %p786_p4 }
  0x54   : > { %794 = shalt.err (!%p791_p8)
}
  0x55   : > { %s967_s29 = smov 128   ;;  %s968_s21 = smov 8  }
  0x56   : > { %s1322_s25 = sshll.u32 %s1348_s16, 7 }
  0x57   : > { %233 = dma.hbm_to_vmem [thread:$0]  (%p1129_p7), %s1140_s7, %s1322_s25, %s228_s24, %s1126_s10, %s967_s29, %s967_s29, %s968_s21  }
  0x58 PF: > { %236 = sbr.rel (!%p1078_p5) target bundleno = 124 (0x7c), region = 32  ;;  %s237_s13 = sand.u32 (%p1078_p5), 1, %s943_s26  }
  0x59   : > { %s604_s17 = sshll.u32 (%p1078_p5), %s1342_s12, 1  ;;  %s602_s9 = sshll.u32 (%p1078_p5), %s237_s13, 4 }
  0x5a   : > { %s247_s20 = ssub.s32 (%p1078_p5), 5, %s604_s17  ;;  %s1170_s1 = scalar_lea.sflag (%p1078_p5), [#allocation9], %s237_s13 }
  0x5b   : > { %p248_p10 = scmp.lt.s32.totalorder (%p1078_p5), %s247_s20, 2  ;;  %s241_s24 = scalar_lea.vmem (%p1078_p5), [#allocation8], %s602_s9 }
  0x5d   : > { %s1350_s20 = smov (!%p248_p10, %s247_s20), 2 }
  0x5e   : > { %s605_s8 = sshll.u32 %s1350_s20, 3 }
  0x5f   : > { %s251_s19 = ssub.s32 16, %s605_s8 }
  0x60   : > { %s252_s30 = sshll.u32 %s251_s19, 4 }
  0x61   : > { %253 = vsyncadd %s1170_s1, %s252_s30  ;;  %p1173_p5 = scmp.ne.s32.totalorder %s605_s8, 0  ;;  %s627_s14 = sshll.u32 %s1342_s12, 4 }
  0x62   : > { %s256_s29 = scalar_lea.hbm %s1298_s2, %s627_s14  ;;  %s1181_s21 = sshll.u32 %s241_s24, 4  ;;  %s261_s21 = int_to_ptr.vmem [resolvable:$true] %s1181_s21 }
  0x63   : > { %s258_s25 = sshll.u32 %s256_s29, 4  ;;  %s609_s13 = sshll.u32 %s1350_s20, 7  ;;  %s1184_s25 = int_to_ptr.hbm [resolvable:$true] %s258_s25 }
  0x64   : > { %s796_s17 = sshra.s32 %s1184_s25, 4  ;;  %s798_s9 = sshrl.u32 %s609_s13, 4  ;;  %s797_s17 = int_to_ptr.hbm [resolvable:$true] %s796_s17 }
  0x65   : > { %s803_s8 = scalar_lea.hbm %s797_s17, %s798_s9  ;;  %s807_s30 = scalar_lea.hbm %s1298_s2, 40 }
  0x66   : > { %p804_p7 = scmp.ne.s32.totalorder %s797_s17, %s803_s8  ;;  %p809_p13 = scmp.lt.s32.totalorder %s807_s30, %s803_s8 }
  0x68   : > { %p805_p11 = pnand %p804_p7, %p1173_p5 }
  0x6a   : > { %p806_p12 = pneg %p805_p11 }
  0x6c   : > { %p811_p0 = pnand %p809_p13, %p806_p12 }
  0x6e   : > { %814 = shalt.err (!%p811_p0)
}
  0x6f   : > { %s815_s24 = sshra.s32 %s261_s21, 4  ;;  %s969_s16 = smov [#allocation8]   ;;  %s816_s24 = int_to_ptr.vmem [resolvable:$true] %s815_s24 }
  0x70   : > { %s822_s14 = scalar_lea.vmem %s816_s24, %s798_s9  ;;  %s826_s7 = scalar_lea.vmem %s969_s16, 32 }
  0x71   : > { %p823_p1 = scmp.ne.s32.totalorder %s816_s24, %s822_s14  ;;  %p828_p8 = scmp.lt.s32.totalorder %s826_s7, %s822_s14 }
  0x73   : > { %p824_p4 = pnand %p823_p1, %p1173_p5 }
  0x75   : > { %p825_p6 = pneg %p824_p4 }
  0x77   : > { %p830_p10 = pnand %p828_p8, %p825_p6 }
  0x79   : > { %833 = shalt.err (!%p830_p10)
}
  0x7a   : > { %s970_s29 = smov 128   ;;  %s971_s17 = smov 8  }
  0x7b   : > { %266 = dma.hbm_to_vmem [thread:$0]  (%p1173_p5), %s1184_s25, %s609_s13, %s261_s21, %s1170_s1, %s970_s29, %s970_s29, %s971_s17  }
  0x7c PF: > { %p610_p7 = scmp.ge.s32.totalorder %s963_s6, 1  ;;  %p268_p11 = scmp.lt.s32.totalorder %s963_s6, 5 }
  0x7e   : > { %p269_p12 = pnand %p610_p7, %p268_p11 }
  0x7f   : > { %s274_s9 = sand.u32 (!%p269_p12), 1, %s939_s0  }
  0x80   : > { %272 = sbr.rel (%p269_p12) target bundleno = 401 (0x191), region = 36  ;;  %s611_s8 = sshll.u32 (!%p269_p12), %s274_s9, 4 }
  0x81   : > { %s275_s12 = scalar_lea.sflag (!%p269_p12), [#allocation6], %s274_s9  ;;  %s278_s19 = scalar_lea.vmem (!%p269_p12), [#allocation5], %s611_s8 }
  0x85   : > { %910 = dma.done.wait (%p1090_p9), %s275_s12, 256  }
  0x86   : > { %912 = vsyncadd (%p1090_p9), %s275_s12, 4294967040  ;;  %s285_s1 = scalar_lea.sflag [#allocation9], %s274_s9  ;;  %s288_s20 = scalar_lea.vmem [#allocation8], %s611_s8 }
  0x87   : > { %914 = dma.done.wait (%p1090_p9), %s285_s1, 256  }
  0x88   : > { %916 = vsyncadd (%p1090_p9), %s285_s1, 4294967040  ;;  %s316_s10 = sand.u32 1, %s927_s23   ;;  %s614_s21 = sshll.u32 %s951_s28, 1 }
  0x89   : > { %s1222_s25 = sshll.u32 %s316_s10, 3  ;;  %s1225_s13 = sadd.s32 %s947_s27, %s614_s21 }
  0x8a   : > { %s318_s30 = scalar_lea.vmem [#allocation10], %s1222_s25  ;;  %p615_p5 = scmp.ne.s32.totalorder %s947_s27, 0 }
  0x8c   : > { %342 = sbr.rel (%p615_p5) target bundleno = 148 (0x94), region = 48 }
  0x91   : > { %v972_v0 = vmov 0.0  }
  0x92   : > { %343 = vst [vmem:[#allocation2] sm:$0xff] %v972_v0 }
  0x93   : > { %344 = vst [vmem:[#allocation2 + $0x8] sm:$0xff] %v972_v0 }
  0x94 PF: > { %v345_v1 = vld [vmem:[%s278_s19] sm:$0xff]  ;;  %v346_v2 = vld [vmem:[%s278_s19 + $0x8] sm:$0xff]  ;;  %p616_p9 = scmp.ge.s32.totalorder %s1225_s13, 2 }
  0x95   : > { %v349_v3 = vld [vmem:[%s1299_s3] sm:$0x1]  ;;  %v357_v6 = vadd.f32 1e-07, %v345_v1  ;;  %v358_v7 = vadd.f32 1e-07, %v346_v2 }
  0x96   : > { %v350_v4 = vld [vmem:[%s1300_s4] sm:$0x1]  ;;  %v351_v5 = vsub.f32 0.0, %v349_v3  ;;  %v373_v8 = vsub.f32 1.0, %v345_v1  ;;  %v374_v9 = vsub.f32 1.0, %v346_v2  ;;  %v348_v14 = vld [vmem:[%s288_s20 + $0x8] sm:$0xff] }
  0x97   : > { %735 = vlog2.f32 %v357_v6  ;;  %v365_v10 = vsub.f32 0.0, %v350_v4  ;;  %v347_v11 = vld [vmem:[%s288_s20] sm:$0xff]  ;;  %v367_v18 = vsub.f32 1.0, %v348_v14 }
  0x98   : > { %737 = vlog2.f32 %v358_v7  ;;  %v375_v12 = vadd.f32 1e-07, %v373_v8  ;;  %v376_v13 = vadd.f32 1e-07, %v374_v9  ;;  %v353_v15 = vperm.slane %v351_v5, 0 }
  0x99   : > { %v366_v16 = vsub.f32 1.0, %v347_v11  ;;  %v369_v17 = vperm.slane %v365_v10, 0 }
  0x9a   : > { %739 = vlog2.f32 %v375_v12  ;;  %v355_v20 = vmul.f32 %v353_v15, %v347_v11  ;;  %v356_v22 = vmul.f32 %v353_v15, %v348_v14 }
  0x9b   : > { %741 = vlog2.f32 %v376_v13  ;;  %v371_v25 = vmul.f32 %v369_v17, %v366_v16  ;;  %v372_v27 = vmul.f32 %v369_v17, %v367_v18 }
  0x9d   : > { %v736_v19 = vpop.eup %735 }
  0x9e   : > { %v738_v21 = vpop.eup %737  ;;  %v360_v23 = vmul.f32 0.6931472, %v736_v19 }
  0x9f   : > { %v362_v24 = vmul.f32 0.6931472, %v738_v21 }
  0xa0   : > { %v740_v26 = vpop.eup %739  ;;  %v363_v29 = vmul.f32 %v360_v23, %v355_v20 }
  0xa1   : > { %v742_v28 = vpop.eup %741  ;;  %v378_v30 = vmul.f32 0.6931472, %v740_v26  ;;  %v364_v31 = vmul.f32 %v362_v24, %v356_v22 }
  0xa2   : > { %v380_v32 = vmul.f32 0.6931472, %v742_v28  ;;  %388 = sbr.rel (%p616_p9) target bundleno = 172 (0xac), region = 52 }
  0xa3   : > { %v381_v33 = vmul.f32 %v378_v30, %v371_v25 }
  0xa4   : > { %v382_v34 = vmul.f32 %v380_v32, %v372_v27 }
  0xa5   : > { %v383_v35 = vadd.f32 %v381_v33, %v363_v29 }
  0xa6   : > { %v384_v36 = vadd.f32 %v382_v34, %v364_v31 }
  0xa7   : > { %v389_v37 = vld [vmem:[#allocation2] sm:$0xff]  ;;  %v390_v38 = vld [vmem:[#allocation2 + $0x8] sm:$0xff] }
  0xa8   : > { %v391_v39 = vadd.f32 %v389_v37, %v383_v35  ;;  %v392_v40 = vadd.f32 %v390_v38, %v384_v36 }
  0xaa   : > { %393 = vst [vmem:[#allocation2] sm:$0xff] %v391_v39 }
  0xab   : > { %394 = vst [vmem:[#allocation2 + $0x8] sm:$0xff] %v392_v40 }
  0xac PF: > { %p617_p13 = scmp.ne.s32.totalorder %s1225_s13, 2 }
  0xad   : > { %s399_s7 = sld [smem:[#allocation4]] (!%p617_p13)  ;;  %s619_s29 = sshll.u32 (!%p617_p13), %s1225_s13, 4 }
  0xae   : > { %398 = sbr.rel (%p617_p13) target bundleno = 194 (0xc2), region = 56  ;;  %s618_s17 = sld [smem:[#allocation4 + $0x1]] (!%p617_p13) }
  0xb3   : > { %v401_v41 = vlaneseq  ;;  %v405_v42 = vstv %s619_s29  ;;  %v410_v47 = vstv %s399_s7  ;;  %v421_v50 = vld [vmem:[#allocation2] sm:$0xff]  ;;  %v422_v52 = vld [vmem:[#allocation2 + $0x8] sm:$0xff] }
  0xb4   : > { %v415_v49 = vstv %s618_s17 }
  0xb5   : > { %v402_v43 = vshrl.u32 %v401_v41, 7  ;;  %v409_v45 = vand.u32 127, %v401_v41 }
  0xb7   : > { %v406_v44 = vadd.s32 %v405_v42, %v402_v43  ;;  %v403_v46 = vadd.s32 8, %v402_v43  ;;  %vm416_vm2 = vcmp.lt.s32.totalorder %v409_v45, %v415_v49 }
  0xb9   : > { %v407_v48 = vadd.s32 %v405_v42, %v403_v46  ;;  %vm411_vm0 = vcmp.lt.s32.totalorder %v406_v44, %v410_v47  ;;  %vm413_vm1 = vcmp.eq.s32.totalorder %v406_v44, %v410_v47 }
  0xba   : > { %vm417_vm4 = vmand %vm413_vm1, %vm416_vm2 }
  0xbb   : > { %vm414_vm3 = vcmp.eq.s32.totalorder %v407_v48, %v410_v47  ;;  %vm412_vm5 = vcmp.lt.s32.totalorder %v407_v48, %v410_v47  ;;  %vm419_vm6 = vmor %vm411_vm0, %vm417_vm4 }
  0xbc   : > { %v423_v51 = vsel %vm419_vm6, %v383_v35, 0.0  ;;  %vm418_vm7 = vmand %vm414_vm3, %vm416_vm2 }
  0xbd   : > { %v425_v53 = vadd.f32 %v423_v51, %v421_v50  ;;  %vm420_vm8 = vmor %vm412_vm5, %vm418_vm7 }
  0xbe   : > { %v424_v54 = vsel %vm420_vm8, %v384_v36, 0.0 }
  0xbf   : > { %427 = vst [vmem:[#allocation2] sm:$0xff] %v425_v53  ;;  %v426_v55 = vadd.f32 %v424_v54, %v422_v52 }
  0xc1   : > { %428 = vst [vmem:[#allocation2 + $0x8] sm:$0xff] %v426_v55 }
  0xc2 PF: > { %p620_p0 = scmp.ne.s32.totalorder %s947_s27, 1 }
  0xc3   : > { %s621_s9 = sld [smem:[#allocation4 + $0x2]] (!%p620_p0) }
  0xc4   : > { %432 = sbr.rel (%p620_p0) target bundleno = 386 (0x182), region = 60 }
  0xc9   : > { %v451_v56 = vld [vmem:[#allocation2] sm:$0xff]  ;;  %v452_v57 = vld [vmem:[#allocation2 + $0x8] sm:$0xff]  ;;  %s434_s8 = scvt.s32.f32 %s621_s9 }
  0xca   : > { %v453_v58 = vadd.f32 %v452_v57, %v451_v56 }
  0xcb   : > { %v435_v59 = vstv %s434_s8 }
  0xcc   : > { %454 = vadd.xlane.f32.xlu0 %v453_v58  ;;  %743 = vrcp.f32 %v435_v59  ;;  %vm441_vm9 = vweird.f32 %v435_v59  ;;  %v445_v0 = vand.u32 2147483647, %v435_v59  ;;  %v447_v1 = vand.u32 2147483648, %v435_v59 }
  0xce   : > { %vm446_vm12 = vcmp.eq.f32.partialorder %v445_v0, 8.507059e+37  ;;  %v448_v3 = vor.u32 1.1754944e-38, %v447_v1 }
  0xd2   : > { %v744_v60 = vpop.eup %743 }
  0xd3   : > { %v437_v61 = vmul.f32 %v744_v60, %v435_v59  ;;  %vm442_vm10 = vweird.f32 %v744_v60 }
  0xd4   : > { %vm443_vm11 = vmor %vm441_vm9, %vm442_vm10 }
  0xd5   : > { %v438_v62 = vsub.f32 1.0, %v437_v61 }
  0xd7   : > { %v439_v63 = vmul.f32 %v744_v60, %v438_v62 }
  0xd9   : > { %v440_v2 = vadd.f32 %v744_v60, %v439_v63 }
  0xdb   : > { %v444_v4 = vsel %vm443_vm11, %v744_v60, %v440_v2 }
  0xdc   : > { %v449_v5 = vsel %vm446_vm12, %v448_v3, %v444_v4 }
  0xdd   : > { %628 = vpush %v449_v5 }
 0x10e   : > { %s629_s27 = spop %628 }
 0x13f   : > { %v455_v6 = vpop.xlane.xlu0 %454 }
 0x140   : > { %v456_v7 = vrot.slane %v455_v6, 4 }
 0x142   : > { %v457_v8 = vadd.f32 %v456_v7, %v455_v6 }
 0x144   : > { %v458_v9 = vrot.slane %v457_v8, 2 }
 0x146   : > { %v459_v10 = vadd.f32 %v458_v9, %v457_v8 }
 0x148   : > { %v460_v11 = vrot.slane %v459_v10, 1 }
 0x14a   : > { %v461_v12 = vadd.f32 %v460_v11, %v459_v10 }
 0x14c   : > { %630 = vpush %v461_v12 }
 0x17d   : > { %s631_s12 = spop %630 }
 0x17e   : > { %s463_s19 = smul.f32 %s631_s12, %s629_s27 }
 0x180   : > { %v464_v13 = vstv %s463_s19 }
 0x181   : > { %465 = vst [vmem:[%s318_s30] sm:$0xff] %v464_v13 }
 0x182 PF: > { %s623_s1 = sshll.u32 %s951_s28, 3  ;;  %s479_s18 = sshll.u32 %s318_s30, 4  ;;  %s480_s18 = int_to_ptr.vmem [resolvable:$true] %s479_s18 }
 0x183   : > { %s477_s13 = scalar_lea.hbm %s1301_s5, %s623_s1  ;;  %s467_s14 = scalar_lea.sflag [#allocation7], %s316_s10 }
 0x184   : > { %s481_s24 = sshll.u32 %s477_s13, 4  ;;  %s855_s17 = scalar_lea.hbm %s1301_s5, 16  ;;  %s482_s24 = int_to_ptr.hbm [resolvable:$true] %s481_s24 }
 0x185   : > { %s849_s16 = sshra.s32 %s482_s24, 4  ;;  %s850_s16 = int_to_ptr.hbm [resolvable:$true] %s849_s16 }
 0x186   : > { %s851_s7 = scalar_lea.hbm %s850_s16, 8  ;;  %p856_p8 = scmp.lt.s32.totalorder %s850_s16, %s1301_s5 }
 0x187   : > { %p852_p1 = scmp.ne.s32.totalorder %s850_s16, %s851_s7  ;;  %p857_p10 = scmp.lt.s32.totalorder %s855_s17, %s851_s7 }
 0x189   : > { %p853_p4 = pnand %p852_p1, %p1110_p2  ;;  %p858_p7 = por %p857_p10, %p856_p8 }
 0x18b   : > { %p854_p6 = pneg %p853_p4 }
 0x18d   : > { %p859_p11 = pnand %p858_p7, %p854_p6 }
 0x18f   : > { %862 = shalt.err (!%p859_p11)
}
 0x190   : > { %634 = dma.vmem_to_hbm [thread:$0]  (%p1110_p2), %s480_s18, 128, %s482_s24, %s467_s14  }
 0x191 PF: > { %p640_p12 = scmp.ge.s32.totalorder %s963_s6, 2  ;;  %s493_s10 = sand.u32 1, %s923_s22  }
 0x192   : > { %s494_s25 = scalar_lea.sflag [#allocation7], %s493_s10 }
 0x193   : > { %p637_p5 = pnand %p640_p12, %p1114_p3 }
 0x195   : > { %p638_p9 = pneg %p637_p5 }
 0x197   : > { %918 = dma.done.wait (%p638_p9), %s494_s25, 128  }
 0x198   : > { %920 = vsyncadd (%p638_p9), %s494_s25, 4294967168  ;;  %s32_s6 = sadd.s32 1, %s963_s6   ;;  %s1324_s30 = sld [smem:[#allocation15_spill]] }
 0x199   : > { %p29_p13 = scmp.ge.s32.totalorder %s32_s6, 6   ;;  %s1325_s24 = sld [smem:[#allocation20_spill]] }
 0x19a   : > { %s1326_s11 = sld [smem:[#allocation21_spill]]  ;;  %s1331_s22 = smov %s927_s23 }
 0x19b   : > { %s1327_s27 = sld [smem:[#allocation16_spill]]  ;;  %s1333_s25 = smov %s939_s0 }
 0x19c   : > { %s1328_s28 = sld [smem:[#allocation17_spill]]  ;;  %s1334_s0 = smov %s943_s26 }
 0x19d   : > { %s1329_s29 = sld [smem:[#allocation18_spill]] }
 0x19e   : > { %s1330_s12 = sld [smem:[#allocation19_spill]]  ;;  %s1332_s23 = smov %s1324_s30 }
 0x1a0   : > { %s1335_s26 = smov %s1326_s11  ;;  %31 = sbr.rel (!%p29_p13) target bundleno = 17 (0x11), region = 110 }
 0x1a4   : > { %s1336_s30 = smov %s1330_s12 }
 0x1a5   :  { %500 = vsyncpa [#allocation6], 1 }
 0x1a6   :  { %502 = vsyncpa [#allocation6 + $0x1], 1 }
 0x1a7   :  { %503 = vsyncpa [#allocation9], 1 }
 0x1a8   :  { %505 = vsyncpa [#allocation9 + $0x1], 1 }
 0x1a9   :  { %506 = vsyncpa [#allocation7], 1 }
 0x1aa   :  { %508 = vsyncpa [#allocation7 + $0x1], 1 }

</bundles_post_ra>
